<compile_context>
chip_gen: v6e
topology: v6e:2x2x1
jax: 0.10.0
libtpu: 0.0.40
codegen_flags: <defaults>
</compile_context>

<pallas_src>
import functools
import warnings

import jax
import jax.numpy as jnp
import numpy as np
from jax.experimental import pallas as pl
from jax.experimental.pallas import tpu as pltpu

warnings.filterwarnings("ignore", message="Some donated buffers were not usable")


# --------------------------- generation config ------------------------------ #

def _detect_tile_budget():
    """(max tile rows, vmem_limit_bytes) per TPU generation."""
    try:
        kind = jax.devices()[0].device_kind.lower()
    except Exception:  # pragma: no cover - defensive
        kind = ""
    if ("v5" in kind) or ("v6" in kind):
        return 1024, 64 * 1024 * 1024   # 128 MiB physical VMEM
    return 512, 40 * 1024 * 1024        # v7x (64 MiB physical) / unknown: conservative


_MAX_TILE_ROWS, _VMEM_LIMIT = _detect_tile_budget()
_LANE_CANDIDATES = (512, 384, 256, 128)   # lane-dense widths (multiples of 128)


# ------------------------------ kernels ------------------------------------- #

def _lif_step_spike_kernel(ts_ref, x_ref, mem_ref, out_ref, lst_ref,
                           spk_o_ref, mem_o_ref, lst_o_ref, *, leak, threshold):
    x = x_ref[...]
    mem = leak * mem_ref[...] + x - threshold * out_ref[...]
    spiked = mem > threshold                        # reuse the mask for spike + lst
    spike = spiked.astype(x.dtype)
    mem_o_ref[...] = mem
    spk_o_ref[...] = spike
    t = ts_ref[0].astype(lst_ref.dtype)             # scalar timestep from SMEM
    lst_o_ref[...] = jnp.where(spiked, t, lst_ref[...])


def _lif_step_no_spike_kernel(x_ref, mem_ref, mem_o_ref, *, leak):
    mem_o_ref[...] = leak * mem_ref[...] + x_ref[...]


def _lif_seq_spike_kernel(ts_ref, x_ref, mem_in_ref, out_in_ref, lst_in_ref,
                          spk_seq_ref, mem_seq_ref,
                          mem_ref, out_ref, lst_ref, *, leak, threshold):
    # grid = (row_tiles, T): t is the trailing "arbitrary" axis, so for each row
    # tile the state output blocks stay resident in VMEM across all timesteps.
    t = pl.program_id(1)

    @pl.when(t == 0)
    def _():
        mem_ref[...] = mem_in_ref[...]
        out_ref[...] = out_in_ref[...]
        lst_ref[...] = lst_in_ref[...]

    x = x_ref[0]
    mem = leak * mem_ref[...] + x - threshold * out_ref[...]
    spiked = mem > threshold
    spike = spiked.astype(x.dtype)
    mem_ref[...] = mem
    out_ref[...] = spike
    lst_ref[...] = jnp.where(spiked, (ts_ref[0] + t).astype(lst_ref.dtype),
                             lst_ref[...])
    spk_seq_ref[0] = spike
    mem_seq_ref[0] = mem


def _lif_seq_no_spike_kernel(x_ref, mem_in_ref, mem_seq_ref, mem_ref, *, leak):
    @pl.when(pl.program_id(1) == 0)
    def _():
        mem_ref[...] = mem_in_ref[...]

    mem = leak * mem_ref[...] + x_ref[0]
    mem_ref[...] = mem
    mem_seq_ref[0] = mem


# ------------------------------ wrapper -------------------------------------- #

class LIFNeuronLayer2D:
    """Pallas-backed forward pass of the PyTorch LIFNeuronLayer2D.

    forward(x, time_step): one timestep (stateful, PyTorch-style API).
    forward_sequence(xs, start_time_step=0): all timesteps fused into a single
        pallas_call (state stays VMEM-resident across the T axis).
    State (membrane / output / last_spike_time) is carried between calls in a
    lane-dense (rows, lane) layout and updated in place.
    """

    def __init__(self, leak, threshold, activation_name="threshold_spike",
                 no_spiking=False):
        self.leak = float(leak)
        self.threshold = float(threshold)
        self.no_spiking = no_spiking
        # TODO(synk): get_activation(activation_name) is not defined in the spec;
        # a hard-threshold spike forward (membrane > threshold) is used and
        # last_spike_time is not consumed by the activation itself.
        self.activation_name = activation_name
        self._shape = None
        self._dtype = None
        self.membrane = None            # (rows, lane) padded layout
        self.output = None
        self.last_spike_time = None

    # -------------------- layout / state management ------------------------ #

    def _setup_layout(self, shape, dtype):
        self._shape = tuple(int(s) for s in shape)
        self._dtype = jnp.dtype(dtype)
        size = int(np.prod(self._shape, dtype=np.int64))
        # Zero-copy layout when possible: largest lane width dividing the size.
        lane = next((c for c in _LANE_CANDIDATES if size % c == 0),
                    _LANE_CANDIDATES[0])
        rows = -(-size // lane)
        if rows >= 8 and rows % 8 == 0:
            # Multiple-of-8 tile that divides rows exactly (no padding); aim for
            # >= 2 row tiles so the v7x megacore can shard the row axis.
            cap = rows if rows < 16 else max(8, (rows // 2) // 8 * 8)
            tile = min(_MAX_TILE_ROWS, cap)
            while rows % tile:
                tile -= 8
            tile_rows, padded_rows = tile, rows
        elif rows <= _MAX_TILE_ROWS:
            tile_rows, padded_rows = rows, rows          # one full-array block
        else:
            tile_rows = _MAX_TILE_ROWS
            padded_rows = -(-rows // tile_rows) * tile_rows
        self._size = size
        self._lane = lane
        self._rows = padded_rows
        self._tile_rows = tile_rows
        self._padded_size = padded_rows * lane
        self._needs_pad = self._padded_size != size
        self._grid_rows = padded_rows // tile_rows
        self._build_callables()

    def _to_2d(self, a):
        flat = a.reshape(self._size)
        if self._needs_pad:
            flat = jnp.pad(flat, (0, self._padded_size - self._size))
        return flat.reshape(self._rows, self._lane)

    def _from_2d(self, a2d):
        if self._needs_pad:
            return a2d.reshape(self._padded_size)[: self._size].reshape(self._shape)
        return a2d.reshape(self._shape)

    def _seq_to_3d(self, xs):
        t = xs.shape[0]
        flat = xs.reshape(t, self._size)
        if self._needs_pad:
            flat = jnp.pad(flat, ((0, 0), (0, self._padded_size - self._size)))
        return flat.reshape(t, self._rows, self._lane)

    def _seq_from_3d(self, a3d):
        t = a3d.shape[0]
        if self._needs_pad:
            return a3d.reshape(t, self._padded_size)[:, : self._size].reshape(
                (t,) + self._shape)
        return a3d.reshape((t,) + self._shape)

    def _init_neurons(self, shape, dtype):
        if self._shape != tuple(shape) or self._dtype != jnp.dtype(dtype):
            self._setup_layout(shape, dtype)
        st = (self._rows, self._lane)
        # Distinct buffers (each is donated on the next call).
        self.membrane = jnp.zeros(st, self._dtype)
        self.output = jnp.zeros(st, self._dtype)
        self.last_spike_time = jnp.full(st, -1.0, self._dtype)

    # ------------------------- jitted pallas calls -------------------------- #

    def _build_callables(self):
        leak, threshold = self.leak, self.threshold
        rows, lane, tr = self._rows, self._lane, self._tile_rows
        grid_rows, dtype = self._grid_rows, self._dtype
        state_sds = jax.ShapeDtypeStruct((rows, lane), dtype)
        to2d, from2d = self._to_2d, self._from_2d
        to3d, from3d = self._seq_to_3d, self._seq_from_3d

        step_params = pltpu.CompilerParams(
            dimension_semantics=("parallel",), vmem_limit_bytes=_VMEM_LIMIT)
        seq_params = pltpu.CompilerParams(
            dimension_semantics=("parallel", "arbitrary"),
            vmem_limit_bytes=_VMEM_LIMIT)

        # ------------------------- per-timestep path ------------------------ #
        def step_spike(ts, x, mem2d, out2d, lst2d):
            spec = pl.BlockSpec((tr, lane), lambda i, ts_ref: (i, 0))
            spk_n, mem_n, lst_n = pl.pallas_call(
                functools.partial(_lif_step_spike_kernel,
                                  leak=leak, threshold=threshold),
                grid_spec=pltpu.PrefetchScalarGridSpec(
                    num_scalar_prefetch=1,
                    grid=(grid_rows,),
                    in_specs=[spec, spec, spec, spec],
                    out_specs=(spec, spec, spec)),
                out_shape=(state_sds, state_sds, state_sds),
                # In-place state update. Input indices count the scalar-prefetch
                # operand (0 = ts): 2 = membrane -> out 1, 3 = prev spikes ->
                # out 0, 4 = last_spike_time -> out 2.
                input_output_aliases={2: 1, 3: 0, 4: 2},
                compiler_params=step_params,
            )(ts, to2d(x), mem2d, out2d, lst2d)
            return from2d(spk_n), from2d(mem_n), mem_n, spk_n, lst_n

        def step_no_spike(x, mem2d):
            spec = pl.BlockSpec((tr, lane), lambda i: (i, 0))
            mem_n = pl.pallas_call(
                functools.partial(_lif_step_no_spike_kernel, leak=leak),
                grid_spec=pltpu.PrefetchScalarGridSpec(
                    num_scalar_prefetch=0,
                    grid=(grid_rows,),
                    in_specs=[spec, spec],
                    out_specs=spec),
                out_shape=state_sds,
                input_output_aliases={1: 0},
                compiler_params=step_params,
            )(to2d(x), mem2d)
            return from2d(mem_n), mem_n

        # ---------------------- fused whole-sequence path ------------------- #
        def seq_spike(ts0, xs, mem2d, out2d, lst2d):
            t_steps = xs.shape[0]
            x_spec = pl.BlockSpec((1, tr, lane), lambda i, t, ts: (t, i, 0))
            st_spec = pl.BlockSpec((tr, lane), lambda i, t, ts: (i, 0))
            seq_sds = jax.ShapeDtypeStruct((t_steps, rows, lane), dtype)
            spk3, mem3, mem_n, out_n, lst_n = pl.pallas_call(
                functools.partial(_lif_seq_spike_kernel,
                                  leak=leak, threshold=threshold),
                grid_spec=pltpu.PrefetchScalarGridSpec(
                    num_scalar_prefetch=1,
                    grid=(grid_rows, t_steps),
                    in_specs=[x_spec, st_spec, st_spec, st_spec],
                    out_specs=(x_spec, x_spec, st_spec, st_spec, st_spec)),
                out_shape=(seq_sds, seq_sds, state_sds, state_sds, state_sds),
                # 0 = ts (scalar prefetch), 1 = xs, 2..4 = carried state.
                input_output_aliases={2: 2, 3: 3, 4: 4},
                compiler_params=seq_params,
            )(ts0, to3d(xs), mem2d, out2d, lst2d)
            return from3d(spk3), from3d(mem3), mem_n, out_n, lst_n

        def seq_no_spike(xs, mem2d):
            t_steps = xs.shape[0]
            x_spec = pl.BlockSpec((1, tr, lane), lambda i, t: (t, i, 0))
            st_spec = pl.BlockSpec((tr, lane), lambda i, t: (i, 0))
            seq_sds = jax.ShapeDtypeStruct((t_steps, rows, lane), dtype)
            mem3, mem_n = pl.pallas_call(
                functools.partial(_lif_seq_no_spike_kernel, leak=leak),
                grid_spec=pltpu.PrefetchScalarGridSpec(
                    num_scalar_prefetch=0,
                    grid=(grid_rows, t_steps),
                    in_specs=[x_spec, st_spec],
                    out_specs=(x_spec, st_spec)),
                out_shape=(seq_sds, state_sds),
                input_output_aliases={1: 1},
                compiler_params=seq_params,
            )(to3d(xs), mem2d)
            return from3d(mem3), mem_n

        self._step_spike = jax.jit(step_spike, donate_argnums=(2, 3, 4))
        self._step_no_spike = jax.jit(step_no_spike, donate_argnums=(1,))
        self._seq_spike = jax.jit(seq_spike, donate_argnums=(2, 3, 4))
        self._seq_no_spike = jax.jit(seq_no_spike, donate_argnums=(1,))

    # ------------------------------ forward --------------------------------- #

    def forward(self, x, time_step):
        # time_step must be a Python int here (as in the PyTorch module): it
        # gates state (re)initialization at the Python level.
        if time_step == 0 or self._shape != tuple(x.shape):
            self._init_neurons(x.shape, x.dtype)
        if self.no_spiking:
            mem, self.membrane = self._step_no_spike(x, self.membrane)
            return None, mem
        ts = jnp.asarray([int(time_step)], dtype=jnp.int32)
        spike, mem, self.membrane, self.output, self.last_spike_time = (
            self._step_spike(ts, x, self.membrane, self.output,
                             self.last_spike_time))
        return spike, mem

    __call__ = forward

    def forward_sequence(self, xs, start_time_step=0):
        """Run every timestep of xs[(T, *feature_shape)] in one fused pallas_call."""
        if start_time_step == 0 or self._shape != tuple(xs.shape[1:]):
            self._init_neurons(xs.shape[1:], xs.dtype)
        if self.no_spiking:
            mems, self.membrane = self._seq_no_spike(xs, self.membrane)
            return None, mems
        ts0 = jnp.asarray([int(start_time_step)], dtype=jnp.int32)
        spikes, mems, self.membrane, self.output, self.last_spike_time = (
            self._seq_spike(ts0, xs, self.membrane, self.output,
                            self.last_spike_time))
        return spikes, mems

    def last_spike_time_full(self):
        return self._from_2d(self.last_spike_time)


# ------------------------------- reference ----------------------------------- #

def _np_lif_reference(xs, leak, threshold):
    mem = np.zeros(xs.shape[1:], np.float32)
    out = np.zeros_like(mem)
    lst = -np.ones_like(mem)
    spikes, mems = [], []
    for t in range(xs.shape[0]):
        mem = leak * mem + xs[t] - threshold * out
        out = (mem > threshold).astype(np.float32)
        lst = np.where(out > 0, np.float32(t), lst)
        spikes.append(out.copy())
        mems.append(mem.copy())
    return np.stack(spikes), np.stack(mems), lst


# --------------------------------- main --------------------------------------- #

if __name__ == "__main__":
    leak, threshold = 0.9, 1.0
    N, C, H, W, T = 2, 4, 16, 16, 4
    key = jax.random.PRNGKey(0)
    xs = jax.random.normal(key, (T, N, C, H, W), dtype=jnp.float32) * 1.5
    xs_np = np.asarray(xs)
    spk_ref, mem_ref, lst_ref = _np_lif_reference(xs_np, leak, threshold)

    # 1) Fused whole-sequence spiking path (single pallas_call over all T).
    layer = LIFNeuronLayer2D(leak, threshold, "threshold_spike")
    spikes, mems = layer.forward_sequence(xs, 0)
    jax.block_until_ready((spikes, mems))
    np.testing.assert_allclose(np.asarray(spikes), spk_ref, rtol=1e-5, atol=1e-5)
    np.testing.assert_allclose(np.asarray(mems), mem_ref, rtol=1e-5, atol=1e-5)
    np.testing.assert_allclose(np.asarray(layer.last_spike_time_full()), lst_ref,
                               rtol=1e-5, atol=1e-5)

    # 2) Per-timestep spiking path (PyTorch-style stateful forward).
    layer_step = LIFNeuronLayer2D(leak, threshold, "threshold_spike")
    for t in range(T):
        spike, mem = layer_step(xs[t], t)
        jax.block_until_ready((spike, mem))
        np.testing.assert_allclose(np.asarray(spike), spk_ref[t], rtol=1e-5, atol=1e-5)
        np.testing.assert_allclose(np.asarray(mem), mem_ref[t], rtol=1e-5, atol=1e-5)
    np.testing.assert_allclose(np.asarray(layer_step.last_spike_time_full()), lst_ref,
                               rtol=1e-5, atol=1e-5)

    # 3) no_spiking path (fused + per-step).
    mem_ns = np.zeros((N, C, H, W), np.float32)
    mems_ns_ref = []
    for t in range(T):
        mem_ns = leak * mem_ns + xs_np[t]
        mems_ns_ref.append(mem_ns.copy())
    mems_ns_ref = np.stack(mems_ns_ref)

    layer_ns = LIFNeuronLayer2D(leak, threshold, no_spiking=True)
    none_out, mems_ns_seq = layer_ns.forward_sequence(xs, 0)
    jax.block_until_ready(mems_ns_seq)
    assert none_out is None
    np.testing.assert_allclose(np.asarray(mems_ns_seq), mems_ns_ref,
                               rtol=1e-5, atol=1e-5)

    layer_ns_step = LIFNeuronLayer2D(leak, threshold, no_spiking=True)
    for t in range(2):
        none_out, mem = layer_ns_step(xs[t], t)
        jax.block_until_ready(mem)
        assert none_out is None
        np.testing.assert_allclose(np.asarray(mem), mems_ns_ref[t],
                                   rtol=1e-5, atol=1e-5)

    # 4) Ragged feature shape that exercises the padded-layout fallback.
    xr = jax.random.normal(jax.random.PRNGKey(1), (3, 1, 3, 5, 7),
                           dtype=jnp.float32) * 1.5
    spk_r_ref, mem_r_ref, _ = _np_lif_reference(np.asarray(xr), leak, threshold)
    layer_r = LIFNeuronLayer2D(leak, threshold, "threshold_spike")
    spikes_r, mems_r = layer_r.forward_sequence(xr, 0)
    jax.block_until_ready((spikes_r, mems_r))
    np.testing.assert_allclose(np.asarray(spikes_r), spk_r_ref, rtol=1e-5, atol=1e-5)
    np.testing.assert_allclose(np.asarray(mems_r), mem_r_ref, rtol=1e-5, atol=1e-5)

    print("KERNEL_OK")
</pallas_src>

<mosaic_0001>
module attributes {stable_mosaic.version = 11 : i64} {
  func.func @_lif_seq_spike_kernel(%arg0: i32, %arg1: i32, %arg2: memref<1xi32, #tpu.memory_space<smem>>, %arg3: memref<1x4x512xf32, #tpu.memory_space<vmem>>, %arg4: memref<4x512xf32, #tpu.memory_space<vmem>>, %arg5: memref<4x512xf32, #tpu.memory_space<vmem>>, %arg6: memref<4x512xf32, #tpu.memory_space<vmem>>, %arg7: memref<1x4x512xf32, #tpu.memory_space<vmem>>, %arg8: memref<1x4x512xf32, #tpu.memory_space<vmem>>, %arg9: memref<4x512xf32, #tpu.memory_space<vmem>>, %arg10: memref<4x512xf32, #tpu.memory_space<vmem>>, %arg11: memref<4x512xf32, #tpu.memory_space<vmem>>) attributes {dimension_semantics = [#tpu.dimension_semantics<parallel>, #tpu.dimension_semantics<arbitrary>], iteration_bounds = array<i64: 1, 4>, scalar_prefetch = 1 : i64, scratch_operands = 0 : i64, tpu.core_type = #tpu.core_type<tc>, window_params = [{transform_indices = @transform_0, window_bounds = array<i64: 1, 4, 512>}, {transform_indices = @transform_1, window_bounds = array<i64: 4, 512>}, {transform_indices = @transform_2, window_bounds = array<i64: 4, 512>}, {transform_indices = @transform_3, window_bounds = array<i64: 4, 512>}, {transform_indices = @transform_4, window_bounds = array<i64: 1, 4, 512>}, {transform_indices = @transform_5, window_bounds = array<i64: 1, 4, 512>}, {transform_indices = @transform_6, window_bounds = array<i64: 4, 512>}, {transform_indices = @transform_7, window_bounds = array<i64: 4, 512>}, {transform_indices = @transform_8, window_bounds = array<i64: 4, 512>}]} {
    %c0_i32 = arith.constant 0 : i32
    %0 = arith.cmpi eq, %arg1, %c0_i32 : i32
    %1 = arith.extui %0 : i1 to i32
    %c0_i32_0 = arith.constant 0 : i32
    %2 = arith.cmpi ne, %1, %c0_i32_0 : i32
    scf.if %2 {
      %c0_24 = arith.constant 0 : index
      %c0_25 = arith.constant 0 : index
      %32 = vector.load %arg4[%c0_24, %c0_25] : memref<4x512xf32, #tpu.memory_space<vmem>>, vector<4x512xf32>
      %c0_26 = arith.constant 0 : index
      %c0_27 = arith.constant 0 : index
      %33 = vector.load %arg9[%c0_26, %c0_27] : memref<4x512xf32, #tpu.memory_space<vmem>>, vector<4x512xf32>
      tpu.vector_store %arg9[%c0_26, %c0_27], %32 {strides = array<i32>} : memref<4x512xf32, #tpu.memory_space<vmem>>, vector<4x512xf32>,
      %c0_28 = arith.constant 0 : index
      %c0_29 = arith.constant 0 : index
      %34 = vector.load %arg5[%c0_28, %c0_29] : memref<4x512xf32, #tpu.memory_space<vmem>>, vector<4x512xf32>
      %c0_30 = arith.constant 0 : index
      %c0_31 = arith.constant 0 : index
      %35 = vector.load %arg10[%c0_30, %c0_31] : memref<4x512xf32, #tpu.memory_space<vmem>>, vector<4x512xf32>
      tpu.vector_store %arg10[%c0_30, %c0_31], %34 {strides = array<i32>} : memref<4x512xf32, #tpu.memory_space<vmem>>, vector<4x512xf32>,
      %c0_32 = arith.constant 0 : index
      %c0_33 = arith.constant 0 : index
      %36 = vector.load %arg6[%c0_32, %c0_33] : memref<4x512xf32, #tpu.memory_space<vmem>>, vector<4x512xf32>
      %c0_34 = arith.constant 0 : index
      %c0_35 = arith.constant 0 : index
      %37 = vector.load %arg11[%c0_34, %c0_35] : memref<4x512xf32, #tpu.memory_space<vmem>>, vector<4x512xf32>
      tpu.vector_store %arg11[%c0_34, %c0_35], %36 {strides = array<i32>} : memref<4x512xf32, #tpu.memory_space<vmem>>, vector<4x512xf32>,
    } else {
    }
    %c0 = arith.constant 0 : index
    %c0_1 = arith.constant 0 : index
    %c0_2 = arith.constant 0 : index
    %3 = vector.load %arg3[%c0, %c0_1, %c0_2] : memref<1x4x512xf32, #tpu.memory_space<vmem>>, vector<1x4x512xf32>
    %4 = vector.shape_cast %3 : vector<1x4x512xf32> to vector<4x512xf32>
    %c0_3 = arith.constant 0 : index
    %c0_4 = arith.constant 0 : index
    %5 = vector.load %arg9[%c0_3, %c0_4] : memref<4x512xf32, #tpu.memory_space<vmem>>, vector<4x512xf32>
    %cst = arith.constant 0.899999976 : f32
    %6 = vector.broadcast %cst : f32 to vector<4x512xf32>
    %7 = arith.mulf %6, %5 : vector<4x512xf32>
    %8 = arith.addf %7, %4 : vector<4x512xf32>
    %c0_5 = arith.constant 0 : index
    %c0_6 = arith.constant 0 : index
    %9 = vector.load %arg10[%c0_5, %c0_6] : memref<4x512xf32, #tpu.memory_space<vmem>>, vector<4x512xf32>
    %cst_7 = arith.constant 1.000000e+00 : f32
    %10 = vector.broadcast %cst_7 : f32 to vector<4x512xf32>
    %11 = arith.mulf %10, %9 : vector<4x512xf32>
    %12 = arith.subf %8, %11 : vector<4x512xf32>
    %cst_8 = arith.constant 1.000000e+00 : f32
    %13 = vector.broadcast %cst_8 : f32 to vector<4x512xf32>
    %14 = arith.cmpf ogt, %12, %13 : vector<4x512xf32>
    %15 = arith.extui %14 : vector<4x512xi1> to vector<4x512xi32>
    %16 = arith.sitofp %15 : vector<4x512xi32> to vector<4x512xf32>
    %c0_9 = arith.constant 0 : index
    %c0_10 = arith.constant 0 : index
    %17 = vector.load %arg9[%c0_9, %c0_10] : memref<4x512xf32, #tpu.memory_space<vmem>>, vector<4x512xf32>
    tpu.vector_store %arg9[%c0_9, %c0_10], %12 {strides = array<i32>} : memref<4x512xf32, #tpu.memory_space<vmem>>, vector<4x512xf32>,
    %c0_11 = arith.constant 0 : index
    %c0_12 = arith.constant 0 : index
    %18 = vector.load %arg10[%c0_11, %c0_12] : memref<4x512xf32, #tpu.memory_space<vmem>>, vector<4x512xf32>
    tpu.vector_store %arg10[%c0_11, %c0_12], %16 {strides = array<i32>} : memref<4x512xf32, #tpu.memory_space<vmem>>, vector<4x512xf32>,
    %c0_13 = arith.constant 0 : index
    %19 = memref.load %arg2[%c0_13] : memref<1xi32, #tpu.memory_space<smem>>
    %20 = arith.addi %19, %arg1 : i32
    %21 = arith.sitofp %20 : i32 to f32
    %c0_14 = arith.constant 0 : index
    %c0_15 = arith.constant 0 : index
    %22 = vector.load %arg11[%c0_14, %c0_15] : memref<4x512xf32, #tpu.memory_space<vmem>>, vector<4x512xf32>
    %23 = vector.broadcast %21 : f32 to vector<4x512xf32>
    %24 = arith.select %14, %23, %22 : vector<4x512xi1>, vector<4x512xf32>
    %c0_16 = arith.constant 0 : index
    %c0_17 = arith.constant 0 : index
    %25 = vector.load %arg11[%c0_16, %c0_17] : memref<4x512xf32, #tpu.memory_space<vmem>>, vector<4x512xf32>
    tpu.vector_store %arg11[%c0_16, %c0_17], %24 {strides = array<i32>} : memref<4x512xf32, #tpu.memory_space<vmem>>, vector<4x512xf32>,
    %c0_18 = arith.constant 0 : index
    %c0_19 = arith.constant 0 : index
    %c0_20 = arith.constant 0 : index
    %26 = vector.load %arg7[%c0_18, %c0_19, %c0_20] : memref<1x4x512xf32, #tpu.memory_space<vmem>>, vector<1x4x512xf32>
    %27 = vector.shape_cast %26 : vector<1x4x512xf32> to vector<4x512xf32>
    %28 = vector.shape_cast %16 : vector<4x512xf32> to vector<1x4x512xf32>
    tpu.vector_store %arg7[%c0_18, %c0_19, %c0_20], %28 {strides = array<i32>} : memref<1x4x512xf32, #tpu.memory_space<vmem>>, vector<1x4x512xf32>,
    %c0_21 = arith.constant 0 : index
    %c0_22 = arith.constant 0 : index
    %c0_23 = arith.constant 0 : index
    %29 = vector.load %arg8[%c0_21, %c0_22, %c0_23] : memref<1x4x512xf32, #tpu.memory_space<vmem>>, vector<1x4x512xf32>
    %30 = vector.shape_cast %29 : vector<1x4x512xf32> to vector<4x512xf32>
    %31 = vector.shape_cast %12 : vector<4x512xf32> to vector<1x4x512xf32>
    tpu.vector_store %arg8[%c0_21, %c0_22, %c0_23], %31 {strides = array<i32>} : memref<1x4x512xf32, #tpu.memory_space<vmem>>, vector<1x4x512xf32>,
    return
  }
  func.func @transform_0(%arg0: i32, %arg1: i32, %arg2: memref<1xi32, #tpu.memory_space<smem>>) -> (i32, i32, i32) {
    %c0_i32 = arith.constant 0 : i32
    %c0_i32_0 = arith.constant 0 : i32
    return %arg1, %arg0, %c0_i32 : i32, i32, i32
  }
  func.func @transform_1(%arg0: i32, %arg1: i32, %arg2: memref<1xi32, #tpu.memory_space<smem>>) -> (i32, i32) {
    %c0_i32 = arith.constant 0 : i32
    %c0_i32_0 = arith.constant 0 : i32
    return %arg0, %c0_i32 : i32, i32
  }
  func.func @transform_2(%arg0: i32, %arg1: i32, %arg2: memref<1xi32, #tpu.memory_space<smem>>) -> (i32, i32) {
    %c0_i32 = arith.constant 0 : i32
    %c0_i32_0 = arith.constant 0 : i32
    return %arg0, %c0_i32 : i32, i32
  }
  func.func @transform_3(%arg0: i32, %arg1: i32, %arg2: memref<1xi32, #tpu.memory_space<smem>>) -> (i32, i32) {
    %c0_i32 = arith.constant 0 : i32
    %c0_i32_0 = arith.constant 0 : i32
    return %arg0, %c0_i32 : i32, i32
  }
  func.func @transform_4(%arg0: i32, %arg1: i32, %arg2: memref<1xi32, #tpu.memory_space<smem>>) -> (i32, i32, i32) {
    %c0_i32 = arith.constant 0 : i32
    %c0_i32_0 = arith.constant 0 : i32
    return %arg1, %arg0, %c0_i32 : i32, i32, i32
  }
  func.func @transform_5(%arg0: i32, %arg1: i32, %arg2: memref<1xi32, #tpu.memory_space<smem>>) -> (i32, i32, i32) {
    %c0_i32 = arith.constant 0 : i32
    %c0_i32_0 = arith.constant 0 : i32
    return %arg1, %arg0, %c0_i32 : i32, i32, i32
  }
  func.func @transform_6(%arg0: i32, %arg1: i32, %arg2: memref<1xi32, #tpu.memory_space<smem>>) -> (i32, i32) {
    %c0_i32 = arith.constant 0 : i32
    %c0_i32_0 = arith.constant 0 : i32
    return %arg0, %c0_i32 : i32, i32
  }
  func.func @transform_7(%arg0: i32, %arg1: i32, %arg2: memref<1xi32, #tpu.memory_space<smem>>) -> (i32, i32) {
    %c0_i32 = arith.constant 0 : i32
    %c0_i32_0 = arith.constant 0 : i32
    return %arg0, %c0_i32 : i32, i32
  }
  func.func @transform_8(%arg0: i32, %arg1: i32, %arg2: memref<1xi32, #tpu.memory_space<smem>>) -> (i32, i32) {
    %c0_i32 = arith.constant 0 : i32
    %c0_i32_0 = arith.constant 0 : i32
    return %arg0, %c0_i32 : i32, i32
  }
}

</mosaic_0001>

<bundles_post_ra>
// kernel: seq_spike.1
= control target key start
LH: loop header
LB: loop body
LE: loop exit
PB: predicated region body
PF: predicated region fallthrough
CT: control target
= control target key end

     0   :  { %s924_s11 = smov 0   ;;  %s926_s12 = smov 0   ;;  %s1046_s0 = inlined_call_operand.<no memory space> [shape: s32[1], index: 0, kind: input, shape index: {}]   ;;  %s1047_s1 = inlined_call_operand.vmem [shape: f32[4,4,512], index: 1, kind: input, shape index: {}]   ;;  %s1048_s2 = inlined_call_operand.vmem [shape: f32[4,512], index: 2, kind: input, shape index: {}, may-alias: {2,7}]   ;;  %s1049_s3 = inlined_call_operand.vmem [shape: f32[4,512], index: 3, kind: input, shape index: {}, may-alias: {3,8}]   ;;  %s1050_s4 = inlined_call_operand.vmem [shape: f32[4,512], index: 4, kind: input, shape index: {}, may-alias: {4,9}]   ;;  %s1051_s5 = inlined_call_operand.vmem [shape: f32[4,4,512], index: 5, kind: output, shape index: {0}]   ;;  %s1052_s6 = inlined_call_operand.vmem [shape: f32[4,4,512], index: 6, kind: output, shape index: {1}]   ;;  %s1053_s7 = inlined_call_operand.vmem [shape: f32[4,512], index: 7, kind: output, shape index: {2}, may-alias: {2,7}]   ;;  %s1054_s8 = inlined_call_operand.vmem [shape: f32[4,512], index: 8, kind: output, shape index: {3}, may-alias: {3,8}]   ;;  %s1055_s9 = inlined_call_operand.vmem [shape: f32[4,512], index: 9, kind: output, shape index: {4}, may-alias: {4,9}]  }
   0x1   :  { %15 = sst [smem:[#allocation3]] %s1046_s0  ;;  %s928_s13 = smov 0  }
   0x2 LB: > { %s30_s0 = sadd.s32 1, %s864_s12  ;;  %p803_p0 = scmp.ge.s32.totalorder %s868_s13, 1  ;;  %s868_s13 = sphi %s928_s13, %s21_s13   ;;  %s864_s12 = sphi %s926_s12, %s1057_s12   ;;  %s860_s11 = sphi %s924_s11, %s1056_s11  }
   0x3   : > { %p31_p1 = scmp.ge.s32.totalorder %s30_s0, 4  ;;  %p325_p2 = scmp.lt.s32.totalorder %s868_s13, 5 }
   0x5   : > { %s1059_s0 = smov (%p31_p1, %s30_s0), 0  ;;  %p326_p3 = pnand %p803_p0, %p325_p2 }
   0x6   : > { %p406_p4 = scmp.lt.s32.totalorder (!%p326_p3), %s860_s11, 3  ;;  %p810_p5 = scmp.ne.s32.totalorder (!%p326_p3), %s860_s11, 0 }
   0x7   : > { %329 = sbr.rel (%p326_p3) target bundleno = 42 (0x2a), region = 36 }
   0xc   : > { %s407_s14 = scalar_select %p406_p4, %s860_s11, 3 }
   0xd   : > { %466 = sbr.rel (%p810_p5) target bundleno = 29 (0x1d), region = 40 }
   0xe   : > { %s818_s15 = sshll.u32 %s407_s14, 4 }
   0xf   : > { %s414_s18 = scalar_lea.vmem %s1047_s1, %s818_s15  ;;  %s952_s21 = scalar_lea.vmem %s1051_s5, %s818_s15 }
  0x10   : > { %s957_s24 = scalar_lea.vmem %s1052_s6, %s818_s15 }
  0x12   : > { %v467_v0 = vld [vmem:[%s1048_s2] sm:$0xff]  ;;  %v468_v1 = vld [vmem:[%s1048_s2 + $0x8] sm:$0xff] }
  0x13   : > { %v471_v2 = vld [vmem:[%s1049_s3] sm:$0xff]  ;;  %469 = vst [vmem:[%s1053_s7] sm:$0xff] %v467_v0  ;;  %470 = vst [vmem:[%s1053_s7 + $0x8] sm:$0xff] %v468_v1  ;;  %v476_v5 = vld [vmem:[%s1050_s4 + $0x8] sm:$0xff] }
  0x14   : > { %473 = vst [vmem:[%s1054_s8] sm:$0xff] %v471_v2  ;;  %v475_v4 = vld [vmem:[%s1050_s4] sm:$0xff] }
  0x15   : > { %477 = vst [vmem:[%s1055_s9] sm:$0xff] %v475_v4  ;;  %478 = vst [vmem:[%s1055_s9 + $0x8] sm:$0xff] %v476_v5 }
  0x1b   : > { %v472_v3 = vld [vmem:[%s1049_s3 + $0x8] sm:$0xff] }
  0x1c   : > { %474 = vst [vmem:[%s1054_s8 + $0x8] sm:$0xff] %v472_v3 }
  0x1d PF: > { %v479_v6 = vld [vmem:[%s414_s18] sm:$0xff]  ;;  %s501_s19 = sld [smem:[#allocation3]]  ;;  %v480_v9 = vld [vmem:[%s414_s18 + $0x8] sm:$0xff]  ;;  %v870_v20 = vmov 0.0  }
  0x1e   : > { %v481_v7 = vld [vmem:[%s1053_s7] sm:$0xff]  ;;  %v482_v10 = vld [vmem:[%s1053_s7 + $0x8] sm:$0xff] }
  0x1f   : > { %v483_v8 = vmul.f32 0.9, %v481_v7  ;;  %v487_v11 = vld [vmem:[%s1054_s8] sm:$0xff]  ;;  %v484_v12 = vmul.f32 0.9, %v482_v10  ;;  %v505_v19 = vld [vmem:[%s1055_s9 + $0x8] sm:$0xff] }
  0x20   : > { %v504_v18 = vld [vmem:[%s1055_s9] sm:$0xff] }
  0x21   : > { %v485_v13 = vadd.f32 %v483_v8, %v479_v6  ;;  %v486_v15 = vadd.f32 %v484_v12, %v480_v9 }
  0x23   : > { %v488_v14 = vld [vmem:[%s1054_s8 + $0x8] sm:$0xff]  ;;  %v489_v16 = vsub.f32 %v485_v13, %v487_v11  ;;  %s502_s18 = sadd.s32 %s860_s11, %s501_s19 }
  0x24   : > { %v490_v17 = vsub.f32 %v486_v15, %v488_v14  ;;  %s503_s30 = scvt.s32.f32 %s502_s18 }
  0x25   : > { %497 = vst [vmem:[%s1053_s7] sm:$0xff] %v489_v16  ;;  %513 = vst [vmem:[%s957_s24] sm:$0xff] %v489_v16  ;;  %vm491_vm0 = vcmp.gt.f32.partialorder %v489_v16, 1.0 }
  0x26   : > { %498 = vst [vmem:[%s1053_s7 + $0x8] sm:$0xff] %v490_v17  ;;  %514 = vst [vmem:[%s957_s24 + $0x8] sm:$0xff] %v490_v17  ;;  %v811_v21 = vsel %vm491_vm0, 1.0, %v870_v20  ;;  %vm492_vm1 = vcmp.gt.f32.partialorder %v490_v17, 1.0  ;;  %v506_v23 = vstv %s503_s30 }
  0x27   : > { %499 = vst [vmem:[%s1054_s8] sm:$0xff] %v811_v21  ;;  %511 = vst [vmem:[%s952_s21] sm:$0xff] %v811_v21  ;;  %v812_v22 = vsel %vm492_vm1, 1.0, %v870_v20  ;;  %v507_v24 = vsel %vm491_vm0, %v506_v23, %v504_v18  ;;  %v508_v25 = vsel %vm492_vm1, %v506_v23, %v505_v19 }
  0x28   : > { %500 = vst [vmem:[%s1054_s8 + $0x8] sm:$0xff] %v812_v22  ;;  %512 = vst [vmem:[%s952_s21 + $0x8] sm:$0xff] %v812_v22 }
  0x29   : > { %509 = vst [vmem:[%s1055_s9] sm:$0xff] %v507_v24  ;;  %510 = vst [vmem:[%s1055_s9 + $0x8] sm:$0xff] %v508_v25 }
  0x2a PF: > { %s21_s13 = sadd.s32 1, %s868_s13   ;;  %s1056_s11 = smov %s864_s12 }
  0x2b   : > { %p18_p6 = scmp.ge.s32.totalorder %s21_s13, 6   ;;  %s1057_s12 = smov %s1059_s0 }
  0x2d   :  { %20 = sbr.rel (!%p18_p6) target bundleno = 2 (0x2), region = 127 }

</bundles_post_ra>
